<compile_context>
chip_gen: v5e
topology: v5e:2x2
jax: 0.10.0
libtpu: 0.0.40
codegen_flags: <defaults>
</compile_context>

<pallas_src>
import functools

import jax
import jax.numpy as jnp
from jax import lax
from jax.experimental import pallas as pl
from jax.experimental.pallas import tpu as pltpu

_LANE = 128
_SUB = 8


def _round_up(x, m):
    return (x + m - 1) // m * m


# ---------------------------------------------------------------------------
# Fused kernel: conv3x3 (as K-dense matmul) + bias + ReLU + GAP mat-vec,
# with the classifier head executed on the last pixel-tile step.
# Grid = (B, n_tiles); batch is 'parallel', pixel tiles are 'arbitrary'.
# ---------------------------------------------------------------------------
def _fused_kernel(xcol_ref, w_ref, b_ref, gvec_ref, fcw_ref, fcb_ref,
                  o_ref, acc_ref, *, n_tiles):
    t = pl.program_id(1)

    @pl.when(t == 0)
    def _init():
        acc_ref[...] = jnp.zeros_like(acc_ref)

    # One K-dense MXU matmul per tile: (rows, Kp) bf16 @ (Kp, Cmid_pad) bf16.
    h = jnp.dot(xcol_ref[0], w_ref[...], preferred_element_type=jnp.float32)
    h = jnp.maximum(h + b_ref[...], 0.0)                     # bias + ReLU (f32 VPU)

    # GAP partial sum as an MXU mat-vec; gvec already carries mask * 1/(H*W).
    acc_ref[...] += jnp.dot(gvec_ref[...], h,
                            preferred_element_type=jnp.float32)

    @pl.when(t == n_tiles - 1)
    def _head():
        o_ref[0] = (jnp.dot(acc_ref[...], fcw_ref[...],
                            preferred_element_type=jnp.float32)
                    + fcb_ref[...])


def _pick_rows(hw, kp, tile_bytes=4 * 1024 * 1024):
    """Pick pixels-per-step: whole image if it fits ~tile_bytes, else a
    128-multiple tile (keeps the lane dim of gvec legal when n_tiles > 1)."""
    hw8 = _round_up(hw, _SUB)
    per_pix = kp * 2                                          # bf16 bytes / pixel
    if hw8 * per_pix <= tile_bytes:
        return hw8, 1
    rows = max(_LANE, (tile_bytes // per_pix) // _LANE * _LANE)
    n_t = -(-hw // rows)
    return rows, n_t


@functools.partial(jax.jit, static_argnames=("num_classes",))
def custom_model_forward(x_nchw, conv_w, conv_b, fc_w, fc_b, *, num_classes):
    """x_nchw: (B, C, H, W) f32; conv_w: (C_mid, C, 3, 3); conv_b: (C_mid,);
    fc_w: (num_classes, C_mid); fc_b: (num_classes,) -> logits (B, num_classes)."""
    B, C, H, W = x_nchw.shape
    C_mid = conv_w.shape[0]
    hw = H * W
    k_raw = 9 * C
    kp = _round_up(k_raw, _LANE)
    cmid_pad = _round_up(C_mid, _LANE)
    nc_pad = _round_up(num_classes, _LANE)

    rows, n_t = _pick_rows(hw, kp)
    hw_pad = rows * n_t

    # --- K-dense im2col in the wrapper: 9 taps concatenated on channels -----
    x_nhwc = jnp.transpose(x_nchw, (0, 2, 3, 1))              # (B, H, W, C)
    xp = jnp.pad(x_nhwc, ((0, 0), (1, 1), (1, 1), (0, 0)))    # 'same' halo
    taps = [xp[:, dh:dh + H, dw:dw + W, :] for dh in range(3) for dw in range(3)]
    xcol = jnp.concatenate(taps, axis=-1).reshape(B, hw, k_raw)
    xcol = jnp.pad(xcol, ((0, 0), (0, hw_pad - hw), (0, kp - k_raw)))
    xcol = xcol.astype(jnp.bfloat16)                          # (B, hw_pad, kp)

    # --- conv weights: (C_mid, C, 3, 3) -> (Kp, Cmid_pad) bf16, K tap-major --
    kmat = jnp.transpose(conv_w, (2, 3, 1, 0)).reshape(k_raw, C_mid)
    kmat = jnp.pad(kmat, ((0, kp - k_raw), (0, cmid_pad - C_mid))).astype(jnp.bfloat16)
    bvec = jnp.pad(conv_b, (0, cmid_pad - C_mid)).reshape(1, cmid_pad).astype(jnp.float32)

    # --- GAP mat-vec weights: 1/(H*W) for real pixels, 0 for pad pixels -----
    gvec = jnp.concatenate(
        [jnp.full((hw,), 1.0 / float(hw), jnp.float32),
         jnp.zeros((hw_pad - hw,), jnp.float32)]).reshape(1, hw_pad)

    # --- classifier head weights (resident in VMEM, used on last step) ------
    fcw = jnp.pad(jnp.transpose(fc_w),
                  ((0, cmid_pad - C_mid), (0, nc_pad - num_classes))).astype(jnp.float32)
    fcb = jnp.pad(fc_b, (0, nc_pad - num_classes)).reshape(1, nc_pad).astype(jnp.float32)

    # --- VMEM budget (fits v7x 64 MiB as well as v5e/v6e 128 MiB) -----------
    est = (2 * rows * kp * 2          # double-buffered input tile (bf16)
           + kp * cmid_pad * 2        # conv weight (bf16)
           + cmid_pad * nc_pad * 4    # head weight (f32)
           + 2 * rows * 4             # gvec tiles (f32)
           + 8 * cmid_pad * 4 + 4 * nc_pad * 4)
    vmem_limit = int(min(max(2 * est, 32 * 1024 * 1024), 64 * 1024 * 1024))

    kern = functools.partial(_fused_kernel, n_tiles=n_t)
    logits_pad = pl.pallas_call(
        kern,
        out_shape=jax.ShapeDtypeStruct((B, 1, nc_pad), jnp.float32),
        grid_spec=pltpu.PrefetchScalarGridSpec(
            num_scalar_prefetch=0,
            grid=(B, n_t),
            in_specs=[
                pl.BlockSpec((1, rows, kp), lambda b, t: (b, t, 0)),     # xcol
                pl.BlockSpec((kp, cmid_pad), lambda b, t: (0, 0)),       # conv W
                pl.BlockSpec((1, cmid_pad), lambda b, t: (0, 0)),        # conv b
                pl.BlockSpec((1, rows), lambda b, t: (0, t)),            # gap vec
                pl.BlockSpec((cmid_pad, nc_pad), lambda b, t: (0, 0)),   # fc W
                pl.BlockSpec((1, nc_pad), lambda b, t: (0, 0)),          # fc b
            ],
            out_specs=pl.BlockSpec((1, 1, nc_pad), lambda b, t: (b, 0, 0)),
            scratch_shapes=[pltpu.VMEM((1, cmid_pad), jnp.float32)],
        ),
        compiler_params=pltpu.CompilerParams(
            dimension_semantics=("parallel", "arbitrary"),
            vmem_limit_bytes=vmem_limit),
    )(xcol, kmat, bvec, gvec, fcw, fcb)

    return logits_pad.reshape(B, nc_pad)[:, :num_classes]


def _reference_forward(x_nchw, conv_w, conv_b, fc_w, fc_b):
    """Pure-JAX reference (same bf16-rounded MXU operands, f32 math)."""
    x = jnp.transpose(x_nchw, (0, 2, 3, 1)).astype(jnp.bfloat16).astype(jnp.float32)
    w = conv_w.astype(jnp.bfloat16).astype(jnp.float32)
    w_hwio = jnp.transpose(w, (2, 3, 1, 0))                   # (3, 3, C, C_mid)
    h = lax.conv_general_dilated(
        x, w_hwio, window_strides=(1, 1), padding="SAME",
        dimension_numbers=("NHWC", "HWIO", "NHWC"),
        precision=lax.Precision.HIGHEST)
    h = jnp.maximum(h + conv_b[None, None, None, :], 0.0)
    g = jnp.mean(h, axis=(1, 2))                              # (B, C_mid)
    return jnp.dot(g, fc_w.T, precision=lax.Precision.HIGHEST) + fc_b[None, :]


if __name__ == "__main__":
    # Small shapes consistent with an image-classifier forward.
    B, C, H, W = 2, 4, 16, 16
    C_mid = 32
    NUM_CLASSES = 8

    key = jax.random.PRNGKey(0)
    kx, kw, kb, kfw, kfb = jax.random.split(key, 5)

    x = jax.random.normal(kx, (B, C, H, W), dtype=jnp.float32)
    conv_w = jax.random.normal(kw, (C_mid, C, 3, 3), dtype=jnp.float32) * 0.1
    conv_b = jax.random.normal(kb, (C_mid,), dtype=jnp.float32) * 0.1
    fc_w = jax.random.normal(kfw, (NUM_CLASSES, C_mid), dtype=jnp.float32) * 0.1
    fc_b = jax.random.normal(kfb, (NUM_CLASSES,), dtype=jnp.float32) * 0.1

    logits = custom_model_forward(x, conv_w, conv_b, fc_w, fc_b,
                                  num_classes=NUM_CLASSES)
    logits = jax.block_until_ready(logits)

    ref = _reference_forward(x, conv_w, conv_b, fc_w, fc_b)
    assert logits.shape == (B, NUM_CLASSES)
    max_err = float(jnp.max(jnp.abs(logits - ref)))
    assert jnp.allclose(logits, ref, atol=2e-2, rtol=2e-2), (
        f"mismatch vs JAX reference (max abs err={max_err})")

    print("KERNEL_OK")
</pallas_src>

<mosaic_0001>
module attributes {stable_mosaic.version = 11 : i64} {
  func.func @_fused_kernel(%arg0: i32, %arg1: i32, %arg2: memref<1x256x128xbf16, #tpu.memory_space<vmem>>, %arg3: memref<128x128xbf16, #tpu.memory_space<vmem>>, %arg4: memref<1x128xf32, #tpu.memory_space<vmem>>, %arg5: memref<1x256xf32, #tpu.memory_space<vmem>>, %arg6: memref<128x128xf32, #tpu.memory_space<vmem>>, %arg7: memref<1x128xf32, #tpu.memory_space<vmem>>, %arg8: memref<1x1x128xf32, #tpu.memory_space<vmem>>, %arg9: memref<1x128xf32, #tpu.memory_space<vmem>>) attributes {dimension_semantics = [#tpu.dimension_semantics<parallel>, #tpu.dimension_semantics<arbitrary>], iteration_bounds = array<i64: 2, 1>, scalar_prefetch = 0 : i64, scratch_operands = 1 : i64, tpu.core_type = #tpu.core_type<tc>, window_params = [{transform_indices = @transform_0, window_bounds = array<i64: 1, 256, 128>}, {pipeline_mode = #tpu.pipeline_mode<synchronous>, transform_indices = @transform_1, window_bounds = array<i64: 128, 128>}, {pipeline_mode = #tpu.pipeline_mode<synchronous>, transform_indices = @transform_2, window_bounds = array<i64: 1, 128>}, {transform_indices = @transform_3, window_bounds = array<i64: 1, 256>}, {pipeline_mode = #tpu.pipeline_mode<synchronous>, transform_indices = @transform_4, window_bounds = array<i64: 128, 128>}, {pipeline_mode = #tpu.pipeline_mode<synchronous>, transform_indices = @transform_5, window_bounds = array<i64: 1, 128>}, {transform_indices = @transform_6, window_bounds = array<i64: 1, 1, 128>}]} {
    %c0_i32 = arith.constant 0 : i32
    %0 = arith.cmpi eq, %arg1, %c0_i32 : i32
    %1 = arith.extui %0 : i1 to i32
    %c0_i32_0 = arith.constant 0 : i32
    %2 = arith.cmpi ne, %1, %c0_i32_0 : i32
    scf.if %2 {
      %cst_17 = arith.constant 0.000000e+00 : f32
      %20 = vector.broadcast %cst_17 : f32 to vector<1x128xf32>
      %c0_18 = arith.constant 0 : index
      %c0_19 = arith.constant 0 : index
      %21 = vector.load %arg9[%c0_18, %c0_19] : memref<1x128xf32, #tpu.memory_space<vmem>>, vector<1x128xf32>
      tpu.vector_store %arg9[%c0_18, %c0_19], %20 {strides = array<i32>} : memref<1x128xf32, #tpu.memory_space<vmem>>, vector<1x128xf32>,
    } else {
    }
    %c0 = arith.constant 0 : index
    %c0_1 = arith.constant 0 : index
    %c0_2 = arith.constant 0 : index
    %3 = vector.load %arg2[%c0, %c0_1, %c0_2] : memref<1x256x128xbf16, #tpu.memory_space<vmem>>, vector<1x256x128xbf16>
    %4 = vector.shape_cast %3 : vector<1x256x128xbf16> to vector<256x128xbf16>
    %c0_3 = arith.constant 0 : index
    %c0_4 = arith.constant 0 : index
    %5 = vector.load %arg3[%c0_3, %c0_4] : memref<128x128xbf16, #tpu.memory_space<vmem>>, vector<128x128xbf16>
    %cst = arith.constant dense<0.000000e+00> : vector<256x128xf32>
    %6 = tpu.matmul %4, %5, %cst {dimension_numbers = #tpu.dot_dimension_numbers<[1], [0], [0], [1], [0, 0, 1, 1], [], []>} : vector<256x128xbf16>, vector<128x128xbf16>, vector<256x128xf32> -> vector<256x128xf32>
    %c0_5 = arith.constant 0 : index
    %c0_6 = arith.constant 0 : index
    %7 = vector.load %arg4[%c0_5, %c0_6] : memref<1x128xf32, #tpu.memory_space<vmem>>, vector<1x128xf32>
    %8 = vector.broadcast %7 : vector<1x128xf32> to vector<256x128xf32>
    %9 = arith.addf %6, %8 : vector<256x128xf32>
    %cst_7 = arith.constant 0.000000e+00 : f32
    %10 = vector.broadcast %cst_7 : f32 to vector<256x128xf32>
    %11 = arith.maximumf %9, %10 : vector<256x128xf32>
    %c0_8 = arith.constant 0 : index
    %c0_9 = arith.constant 0 : index
    %12 = vector.load %arg9[%c0_8, %c0_9] : memref<1x128xf32, #tpu.memory_space<vmem>>, vector<1x128xf32>
    %c0_10 = arith.constant 0 : index
    %c0_11 = arith.constant 0 : index
    %13 = vector.load %arg5[%c0_10, %c0_11] : memref<1x256xf32, #tpu.memory_space<vmem>>, vector<1x256xf32>
    %cst_12 = arith.constant dense<0.000000e+00> : vector<1x128xf32>
    %14 = tpu.matmul %13, %11, %cst_12 {dimension_numbers = #tpu.dot_dimension_numbers<[1], [0], [0], [1], [0, 0, 1, 1], [], []>} : vector<1x256xf32>, vector<256x128xf32>, vector<1x128xf32> -> vector<1x128xf32>
    %15 = arith.addf %12, %14 : vector<1x128xf32>
    %c0_13 = arith.constant 0 : index
    %c0_14 = arith.constant 0 : index
    %16 = vector.load %arg9[%c0_13, %c0_14] : memref<1x128xf32, #tpu.memory_space<vmem>>, vector<1x128xf32>
    tpu.vector_store %arg9[%c0_13, %c0_14], %15 {strides = array<i32>} : memref<1x128xf32, #tpu.memory_space<vmem>>, vector<1x128xf32>,
    %c0_i32_15 = arith.constant 0 : i32
    %17 = arith.cmpi eq, %arg1, %c0_i32_15 : i32
    %18 = arith.extui %17 : i1 to i32
    %c0_i32_16 = arith.constant 0 : i32
    %19 = arith.cmpi ne, %18, %c0_i32_16 : i32
    scf.if %19 {
      %c0_17 = arith.constant 0 : index
      %c0_18 = arith.constant 0 : index
      %20 = vector.load %arg9[%c0_17, %c0_18] : memref<1x128xf32, #tpu.memory_space<vmem>>, vector<1x128xf32>
      %c0_19 = arith.constant 0 : index
      %c0_20 = arith.constant 0 : index
      %21 = vector.load %arg6[%c0_19, %c0_20] : memref<128x128xf32, #tpu.memory_space<vmem>>, vector<128x128xf32>
      %cst_21 = arith.constant dense<0.000000e+00> : vector<1x128xf32>
      %22 = tpu.matmul %20, %21, %cst_21 {dimension_numbers = #tpu.dot_dimension_numbers<[1], [0], [0], [1], [0, 0, 1, 1], [], []>} : vector<1x128xf32>, vector<128x128xf32>, vector<1x128xf32> -> vector<1x128xf32>
      %c0_22 = arith.constant 0 : index
      %c0_23 = arith.constant 0 : index
      %23 = vector.load %arg7[%c0_22, %c0_23] : memref<1x128xf32, #tpu.memory_space<vmem>>, vector<1x128xf32>
      %24 = arith.addf %22, %23 : vector<1x128xf32>
      %c0_24 = arith.constant 0 : index
      %c0_25 = arith.constant 0 : index
      %c0_26 = arith.constant 0 : index
      %25 = vector.load %arg8[%c0_24, %c0_25, %c0_26] : memref<1x1x128xf32, #tpu.memory_space<vmem>>, vector<1x1x128xf32>
      %26 = vector.shape_cast %25 : vector<1x1x128xf32> to vector<1x128xf32>
      %27 = vector.shape_cast %24 : vector<1x128xf32> to vector<1x1x128xf32>
      tpu.vector_store %arg8[%c0_24, %c0_25, %c0_26], %27 {strides = array<i32>} : memref<1x1x128xf32, #tpu.memory_space<vmem>>, vector<1x1x128xf32>,
    } else {
    }
    return
  }
  func.func @transform_0(%arg0: i32, %arg1: i32) -> (i32, i32, i32) {
    %c0_i32 = arith.constant 0 : i32
    %c0_i32_0 = arith.constant 0 : i32
    return %arg0, %arg1, %c0_i32 : i32, i32, i32
  }
  func.func @transform_1(%arg0: i32, %arg1: i32) -> (i32, i32) {
    %c0_i32 = arith.constant 0 : i32
    %c0_i32_0 = arith.constant 0 : i32
    %c0_i32_1 = arith.constant 0 : i32
    return %c0_i32, %c0_i32_0 : i32, i32
  }
  func.func @transform_2(%arg0: i32, %arg1: i32) -> (i32, i32) {
    %c0_i32 = arith.constant 0 : i32
    %c0_i32_0 = arith.constant 0 : i32
    %c0_i32_1 = arith.constant 0 : i32
    return %c0_i32, %c0_i32_0 : i32, i32
  }
  func.func @transform_3(%arg0: i32, %arg1: i32) -> (i32, i32) {
    %c0_i32 = arith.constant 0 : i32
    %c0_i32_0 = arith.constant 0 : i32
    return %c0_i32, %arg1 : i32, i32
  }
  func.func @transform_4(%arg0: i32, %arg1: i32) -> (i32, i32) {
    %c0_i32 = arith.constant 0 : i32
    %c0_i32_0 = arith.constant 0 : i32
    %c0_i32_1 = arith.constant 0 : i32
    return %c0_i32, %c0_i32_0 : i32, i32
  }
  func.func @transform_5(%arg0: i32, %arg1: i32) -> (i32, i32) {
    %c0_i32 = arith.constant 0 : i32
    %c0_i32_0 = arith.constant 0 : i32
    %c0_i32_1 = arith.constant 0 : i32
    return %c0_i32, %c0_i32_0 : i32, i32
  }
  func.func @transform_6(%arg0: i32, %arg1: i32) -> (i32, i32, i32) {
    %c0_i32 = arith.constant 0 : i32
    %c0_i32_0 = arith.constant 0 : i32
    %c0_i32_1 = arith.constant 0 : i32
    return %arg0, %c0_i32, %c0_i32_0 : i32, i32, i32
  }
}

</mosaic_0001>

<bundles_post_ra>
// kernel: custom_model_forward.1
= control target key start
LH: loop header
LB: loop body
LE: loop exit
PB: predicated region body
PF: predicated region fallthrough
CT: control target
= control target key end

     0   :  { %11 = vsyncpa [#allocation4], 0  ;;  %s1394_s0 = inlined_call_operand.vmem [shape: bf16[2,256,128], index: 0, kind: input, shape index: {}]   ;;  %s1395_s1 = inlined_call_operand.vmem [shape: bf16[128,128], index: 1, kind: input, shape index: {}]   ;;  %s1396_s2 = inlined_call_operand.vmem [shape: f32[1,128], index: 2, kind: input, shape index: {}]   ;;  %s1397_s3 = inlined_call_operand.vmem [shape: f32[1,256], index: 3, kind: input, shape index: {}]   ;;  %s1398_s4 = inlined_call_operand.vmem [shape: f32[128,128], index: 4, kind: input, shape index: {}]   ;;  %s1399_s5 = inlined_call_operand.vmem [shape: f32[1,128], index: 5, kind: input, shape index: {}]   ;;  %s1400_s6 = inlined_call_operand.hbm [shape: f32[2,1,128], index: 6, kind: output, shape index: {}]  }
   0x1   :  { %13 = vsyncpa [#allocation4 + $0x1], 0  ;;  %s1131_s21 = smov 0   ;;  %s1133_s22 = smov 0  }
   0x2   :  { %s1135_s23 = smov 0   ;;  %s1137_s24 = smov 0  }
   0x3   :  { %s1139_s25 = smov 0   ;;  %s1141_s26 = smov 0  }
   0x4 LB: > { %s803_s27 = sadd.s32 4294967295, %s1093_s26   ;;  %s804_s28 = sadd.s32 4294967294, %s1093_s26   ;;  %s1093_s26 = sphi %s1141_s26, %s19_s26   ;;  %s1089_s25 = sphi %s1139_s25, %s1407_s25   ;;  %s1085_s24 = sphi %s1137_s24, %s1406_s24   ;;  %s1081_s23 = sphi %s1135_s23, %s1405_s23   ;;  %s1077_s22 = sphi %s1133_s22, %s1404_s22   ;;  %s1073_s21 = sphi %s1131_s21, %s1403_s21  }
   0x5   : > { %s31_s29 = sadd.s32 1, %s1089_s25  ;;  %s176_s30 = sadd.s32 1, %s1081_s23 }
   0x6   : > { %p33_p0 = scmp.ge.s32.totalorder %s31_s29, 2  ;;  %p186_p1 = scmp.ne.s32.totalorder %s1081_s23, %s1077_s22 }
   0x7   : > { %p187_p2 = scmp.eq.s32.totalorder %s803_s27, 1  ;;  %p192_p3 = scmp.ne.s32.totalorder %s1077_s22, %s1073_s21 }
   0x8   : > { %s1409_s29 = smov (%p33_p0, %s31_s29), 0  ;;  %p193_p5 = scmp.eq.s32.totalorder %s804_s28, 1 }
   0x9   : > { %p1171_p4 = por %p187_p2, %p186_p1  ;;  %s173_s8 = ssub.s32 %s1089_s25, %s1409_s29 }
   0xa   : > { %p808_p6 = scmp.ge.s32.totalorder %s1093_s26, 1  ;;  %p174_p7 = scmp.eq.s32.totalorder %s173_s8, 0 }
   0xb   : > { %p1178_p8 = por %p193_p5, %p192_p3  ;;  %p244_p9 = scmp.lt.s32.totalorder %s1093_s26, 3 }
   0xc   : > { %s1184_s10 = scalar_select %p174_p7, %s1081_s23, %s176_s30  }
   0xd   : > { %p245_p10 = pnand %p808_p6, %p244_p9 }
   0xe   : > { %p282_p11 = scmp.lt.s32.totalorder (!%p245_p10), %s1085_s24, 1  ;;  %s718_s15 = scalar_lea.hbm (!%p245_p10), %s1400_s6, %s1085_s24 }
   0xf   : > { %248 = sbr.rel (%p245_p10) target bundleno = 548 (0x224), region = 44  ;;  %s722_s20 = sshll.u32 (!%p245_p10), %s718_s15, 4  ;;  %s723_s20 = int_to_ptr.hbm [resolvable:$true] %s722_s20 }
  0x10   : > { %s1029_s28 = sshra.s32 (!%p245_p10), %s723_s20, 4  ;;  %s1035_s11 = scalar_lea.hbm (!%p245_p10), %s1400_s6, 2  ;;  %s1030_s28 = int_to_ptr.hbm [resolvable:$true] %s1029_s28 }
  0x11   : > { %p1036_p1 = scmp.lt.s32.totalorder (!%p245_p10), %s1030_s28, %s1400_s6 }
  0x14   : > { %v933_v0 = vld [vmem:[%s1395_s1 + $0x38] sm:$0xff]  ;;  %v932_v1 = vld [vmem:[%s1395_s1 + $0x30] sm:$0xff]  ;;  %v931_v2 = vld [vmem:[%s1395_s1 + $0x28] sm:$0xff]  ;;  %s283_s30 = scalar_select %p282_p11, %s1085_s24, 1 }
  0x15   : > { %497 = vmatpush.bf16.msra.mxu0 %v933_v0  ;;  %934 = vmatpush.bf16.msra.mxu1 %v933_v0  ;;  %v930_v3 = vld [vmem:[%s1395_s1 + $0x20] sm:$0xff]  ;;  %v929_v4 = vld [vmem:[%s1395_s1 + $0x18] sm:$0xff]  ;;  %v928_v5 = vld [vmem:[%s1395_s1 + $0x10] sm:$0xff] }
  0x16   : > { %935 = vmatpush.bf16.msra.mxu2 %v933_v0  ;;  %936 = vmatpush.bf16.msra.mxu3 %v933_v0  ;;  %v927_v6 = vld [vmem:[%s1395_s1 + $0x8] sm:$0xff]  ;;  %s909_s12 = sshll.u32 %s283_s30, 7  ;;  %v926_v7 = vld [vmem:[%s1395_s1] sm:$0xff]  ;;  %s1031_s30 = scalar_lea.hbm %s1030_s28, 1 }
  0x17   : > { %s1215_s17 = scalar_lea.vmem %s1394_s0, %s909_s12  ;;  %v1254_v42 = vld [vmem:[%s1396_s2] ss:$0 sm:$0xff]  ;;  %s279_s12 = sand.u32 1, %s1077_s22  }
  0x18   : > { %v910_v8 = vld [vmem:[%s1215_s17] sm:$0xff]  ;;  %v915_v9 = vld [vmem:[%s1215_s17 + $0x28] sm:$0xff]  ;;  %v916_v13 = vld [vmem:[%s1215_s17 + $0x30] sm:$0xff]  ;;  %s280_s18 = scalar_lea.vmem [#allocation3], %s279_s12  ;;  %s710_s27 = scalar_lea.sflag [#allocation4], %s279_s12 }
  0x19   : > { %498 = vmatpush.bf16.msra.mxu0 %v932_v1  ;;  %937 = vmatpush.bf16.msra.mxu1 %v932_v1  ;;  %v919_v10 = vld [vmem:[%s1215_s17 + $0x48] sm:$0xff]  ;;  %v920_v14 = vld [vmem:[%s1215_s17 + $0x50] sm:$0xff]  ;;  %v917_v17 = vld [vmem:[%s1215_s17 + $0x38] sm:$0xff]  ;;  %s720_s19 = sshll.u32 %s280_s18, 4  ;;  %p1032_p12 = scmp.ne.s32.totalorder %s1030_s28, %s1031_s30  ;;  %s721_s19 = int_to_ptr.vmem [resolvable:$true] %s720_s19 }
  0x1a   : > { %938 = vmatpush.bf16.msra.mxu2 %v932_v1  ;;  %939 = vmatpush.bf16.msra.mxu3 %v932_v1  ;;  %v923_v11 = vld [vmem:[%s1215_s17 + $0x68] sm:$0xff]  ;;  %v924_v15 = vld [vmem:[%s1215_s17 + $0x70] sm:$0xff]  ;;  %v921_v18 = vld [vmem:[%s1215_s17 + $0x58] sm:$0xff]  ;;  %p1037_p2 = scmp.lt.s32.totalorder %s1035_s11, %s1031_s30 }
  0x1b   : > { %v911_v12 = vld [vmem:[%s1215_s17 + $0x8] sm:$0xff]  ;;  %v912_v16 = vld [vmem:[%s1215_s17 + $0x10] sm:$0xff]  ;;  %v925_v19 = vld [vmem:[%s1215_s17 + $0x78] sm:$0xff]  ;;  %p1033_p13 = pnand %p1032_p12, %p1171_p4 }
  0x1c   : > { %v913_v20 = vld [vmem:[%s1215_s17 + $0x18] sm:$0xff]  ;;  %v918_v21 = vld [vmem:[%s1215_s17 + $0x40] sm:$0xff]  ;;  %p1038_p3 = por %p1037_p2, %p1036_p1 }
  0x1d   : > { %499 = vmatpush.bf16.msra.mxu0 %v931_v2  ;;  %940 = vmatpush.bf16.msra.mxu1 %v931_v2  ;;  %v922_v22 = vld [vmem:[%s1215_s17 + $0x60] sm:$0xff]  ;;  %p1034_p0 = pneg %p1033_p13 }
  0x1e   : > { %941 = vmatpush.bf16.msra.mxu2 %v931_v2  ;;  %942 = vmatpush.bf16.msra.mxu3 %v931_v2  ;;  %v914_v23 = vld [vmem:[%s1215_s17 + $0x20] sm:$0xff] }
  0x1f   : > { %p1039_p5 = pnand %p1038_p3, %p1034_p0 }
  0x21   : > { %500 = vmatpush.bf16.msra.mxu0 %v930_v3  ;;  %943 = vmatpush.bf16.msra.mxu1 %v930_v3 }
  0x22   : > { %944 = vmatpush.bf16.msra.mxu2 %v930_v3  ;;  %945 = vmatpush.bf16.msra.mxu3 %v930_v3 }
  0x25   : > { %501 = vmatpush.bf16.msra.mxu0 %v929_v4  ;;  %946 = vmatpush.bf16.msra.mxu1 %v929_v4 }
  0x26   : > { %947 = vmatpush.bf16.msra.mxu2 %v929_v4  ;;  %948 = vmatpush.bf16.msra.mxu3 %v929_v4 }
  0x29   : > { %502 = vmatpush.bf16.msra.mxu0 %v928_v5  ;;  %949 = vmatpush.bf16.msra.mxu1 %v928_v5 }
  0x2a   : > { %950 = vmatpush.bf16.msra.mxu2 %v928_v5  ;;  %951 = vmatpush.bf16.msra.mxu3 %v928_v5 }
  0x2d   : > { %503 = vmatpush.bf16.msra.mxu0 %v927_v6  ;;  %952 = vmatpush.bf16.msra.mxu1 %v927_v6 }
  0x2e   : > { %953 = vmatpush.bf16.msra.mxu2 %v927_v6  ;;  %954 = vmatpush.bf16.msra.mxu3 %v927_v6 }
  0x31   : > { %504 = vmatpush.bf16.msra.mxu0 %v926_v7  ;;  %955 = vmatpush.bf16.msra.mxu1 %v926_v7 }
  0x32   : > { %956 = vmatpush.bf16.msra.mxu2 %v926_v7  ;;  %957 = vmatpush.bf16.msra.mxu3 %v926_v7 }
  0x34   : > { %505 = vmatmul.bf16.vlgmr.msra.gmra.mxu0 %v910_v8  ;;  %530 = vmatmul.bf16.vlgmr.msra.gmra.mxu1 %v915_v9 }
  0x35   : > { %550 = vmatmul.bf16.vlgmr.msra.gmra.mxu2 %v919_v10  ;;  %570 = vmatmul.bf16.vlgmr.msra.gmra.mxu3 %v923_v11 }
  0x44   : > { %510 = vmatmul.bf16.gmra.mxu0 %v911_v12  ;;  %535 = vmatmul.bf16.gmra.mxu1 %v916_v13 }
  0x45   : > { %555 = vmatmul.bf16.gmra.mxu2 %v920_v14  ;;  %575 = vmatmul.bf16.gmra.mxu3 %v924_v15 }
  0x54   : > { %515 = vmatmul.bf16.gmra.mxu0 %v912_v16  ;;  %540 = vmatmul.bf16.gmra.mxu1 %v917_v17  ;;  %v686_v16 = vld [vmem:[%s1398_s4 + $0x78] sm:$0xff]  ;;  %v685_v17 = vld [vmem:[%s1398_s4 + $0x70] sm:$0xff] }
  0x55   : > { %560 = vmatmul.bf16.gmra.mxu2 %v921_v18  ;;  %580 = vmatmul.bf16.gmra.mxu3 %v925_v19 }
  0x56   : > { %688 = vmatpush.msrb.mxu3 %v686_v16 }
  0x58   : > { %689 = vmatpush.msrb.mxu3 %v685_v17 }
  0x64   : > { %520 = vmatmul.bf16.gmra.mxu0 %v913_v20  ;;  %545 = vmatmul.bf16.gmra.mxu1 %v918_v21  ;;  %v684_v21 = vld [vmem:[%s1398_s4 + $0x68] sm:$0xff] }
  0x65   : > { %565 = vmatmul.bf16.gmra.mxu2 %v922_v22  ;;  %690 = vmatpush.msrb.mxu3 %v684_v21 }
  0x74   : > { %525 = vmatmul.bf16.gmra.mxu0 %v914_v23 }
  0xb1   : > { %v1233_v24 = vpop.f32.mrf.mxu0  ;;  %v531_v25 = vpop.f32.mrf.mxu1 }
  0xb2   : > { %v532_v60 = vadd.f32 %v1254_v42, %v531_v25  ;;  %v683_v25 = vld [vmem:[%s1398_s4 + $0x60] sm:$0xff] }
  0xb3   : > { %691 = vmatpush.msrb.mxu3 %v683_v25 }
  0xb4   : > { %v596_v3 = vmax.f32 %v532_v60, 0.0  ;;  %v677_v60 = vld [vmem:[%s1398_s4 + $0x30] sm:$0xff] }
  0xb8   : > { %v1235_v26 = vpop.f32.mrf.mxu2  ;;  %v571_v27 = vpop.f32.mrf.mxu3 }
  0xb9   : > { %v1237_v28 = vpop.f32.mrf.mxu0  ;;  %v533_v29 = vpop.f32.mrf.mxu1  ;;  %v572_v7 = vadd.f32 %v1254_v42, %v571_v27 }
  0xba   : > { %v534_v53 = vadd.f32 %v1254_v42, %v533_v29 }
  0xbb   : > { %v612_v11 = vmax.f32 %v572_v7, 0.0  ;;  %v507_v7 = vadd.f32 %v1254_v42, %v1233_v24  ;;  %v673_v24 = vld [vmem:[%s1398_s4 + $0x10] sm:$0xff] }
  0xbc   : > { %v597_v0 = vmax.f32 %v534_v53, 0.0 }
  0xc0   : > { %v1239_v30 = vpop.f32.mrf.mxu2  ;;  %v573_v31 = vpop.f32.mrf.mxu3 }
  0xc1   : > { %v1241_v32 = vpop.f32.mrf.mxu0  ;;  %v536_v33 = vpop.f32.mrf.mxu1  ;;  %v574_v4 = vadd.f32 %v1254_v42, %v573_v31  ;;  %v682_v31 = vld [vmem:[%s1398_s4 + $0x58] sm:$0xff] }
  0xc2   : > { %v537_v52 = vadd.f32 %v1254_v42, %v536_v33  ;;  %692 = vmatpush.msrb.mxu3 %v682_v31 }
  0xc3   : > { %v613_v10 = vmax.f32 %v574_v4, 0.0 }
  0xc4   : > { %v598_v61 = vmax.f32 %v537_v52, 0.0 }
  0xc8   : > { %v1243_v34 = vpop.f32.mrf.mxu2  ;;  %v576_v35 = vpop.f32.mrf.mxu3 }
  0xc9   : > { %v1245_v36 = vpop.f32.mrf.mxu0  ;;  %v538_v37 = vpop.f32.mrf.mxu1  ;;  %v577_v1 = vadd.f32 %v1254_v42, %v576_v35  ;;  %v557_v33 = vadd.f32 %v1254_v42, %v1243_v34  ;;  %v680_v34 = vld [vmem:[%s1398_s4 + $0x48] sm:$0xff] }
  0xca   : > { %v539_v49 = vadd.f32 %v1254_v42, %v538_v37 }
  0xcb   : > { %v614_v8 = vmax.f32 %v577_v1, 0.0 }
  0xcc   : > { %v599_v54 = vmax.f32 %v539_v49, 0.0  ;;  %v552_v49 = vadd.f32 %v1254_v42, %v1235_v26  ;;  %v678_v26 = vld [vmem:[%s1398_s4 + $0x38] sm:$0xff] }
  0xd0   : > { %v1247_v38 = vpop.f32.mrf.mxu2  ;;  %v578_v39 = vpop.f32.mrf.mxu3 }
  0xd1   : > { %v1249_v40 = vpop.f32.mrf.mxu0  ;;  %v541_v41 = vpop.f32.mrf.mxu1  ;;  %v579_v62 = vadd.f32 %v1254_v42, %v578_v39  ;;  %v559_v27 = vadd.f32 %v1254_v42, %v1247_v38  ;;  %v681_v39 = vld [vmem:[%s1398_s4 + $0x50] sm:$0xff] }
  0xd2   : > { %v542_v43 = vadd.f32 %v1254_v42, %v541_v41  ;;  %693 = vmatpush.msrb.mxu3 %v681_v39 }
  0xd3   : > { %v615_v5 = vmax.f32 %v579_v62, 0.0 }
  0xd4   : > { %v600_v50 = vmax.f32 %v542_v43, 0.0  ;;  %v554_v43 = vadd.f32 %v1254_v42, %v1239_v30  ;;  %v679_v30 = vld [vmem:[%s1398_s4 + $0x40] sm:$0xff]  ;;  %694 = vmatpush.msrb.mxu3 %v680_v34 }
  0xd6   : > { %v605_v53 = vmax.f32 %v554_v43, 0.0  ;;  %695 = vmatpush.msrb.mxu3 %v679_v30 }
  0xd8   : > { %v561_v44 = vpop.f32.mrf.mxu2  ;;  %v581_v45 = vpop.f32.mrf.mxu3  ;;  %696 = vmatpush.msrb.mxu3 %v678_v26 }
  0xd9   : > { %v1257_v46 = vpop.f32.mrf.mxu0  ;;  %v543_v47 = vpop.f32.mrf.mxu1  ;;  %v582_v57 = vadd.f32 %v1254_v42, %v581_v45  ;;  %v562_v22 = vadd.f32 %v1254_v42, %v561_v44  ;;  %v607_v44 = vmax.f32 %v559_v27, 0.0 }
  0xda   : > { %v544_v48 = vadd.f32 %v1254_v42, %v543_v47  ;;  %697 = vmatpush.msrb.mxu3 %v677_v60 }
  0xdb   : > { %v616_v2 = vmax.f32 %v582_v57, 0.0  ;;  %v608_v35 = vmax.f32 %v562_v22, 0.0  ;;  %v604_v57 = vmax.f32 %v552_v49, 0.0 }
  0xdc   : > { %v601_v51 = vmax.f32 %v544_v48, 0.0 }
  0xde   : > { %625 = vmatpush.msrb.mxu1 %v601_v51 }
  0xe0   : > { %v563_v55 = vpop.f32.mrf.mxu2  ;;  %v583_v56 = vpop.f32.mrf.mxu3  ;;  %626 = vmatpush.msrb.mxu1 %v600_v50  ;;  %v606_v50 = vmax.f32 %v557_v33, 0.0 }
  0xe1   : > { %v584_v58 = vadd.f32 %v1254_v42, %v583_v56  ;;  %v1265_v59 = vpop.f32.mrf.mxu0  ;;  %v546_v18 = vpop.f32.mrf.mxu1  ;;  %v564_v19 = vadd.f32 %v1254_v42, %v563_v55  ;;  %v519_v55 = vadd.f32 %v1254_v42, %v1257_v46 }
  0xe2   : > { %627 = vmatpush.msrb.mxu1 %v599_v54  ;;  %v522_v51 = vadd.f32 %v1254_v42, %v1265_v59  ;;  %v619_v59 = vld [vmem:[%s1397_s3] sm:$0x3] }
  0xe3   : > { %v617_v63 = vmax.f32 %v584_v58, 0.0  ;;  %v609_v29 = vmax.f32 %v564_v19, 0.0  ;;  %v547_v58 = vadd.f32 %v1254_v42, %v546_v18  ;;  %v591_v1 = vmax.f32 %v519_v55, 0.0  ;;  %v687_v19 = vld [vmem:[%s1399_s5] sm:$0x1] }
  0xe4   : > { %628 = vmatpush.msrb.mxu1 %v598_v61  ;;  %v517_v61 = vadd.f32 %v1254_v42, %v1249_v40  ;;  %v592_v62 = vmax.f32 %v522_v51, 0.0  ;;  %v512_v40 = vadd.f32 %v1254_v42, %v1241_v32 }
  0xe5   : > { %645 = vmatpush.msrb.mxu2 %v617_v63  ;;  %v676_v63 = vld [vmem:[%s1398_s4 + $0x28] sm:$0xff] }
  0xe6   : > { %629 = vmatpush.msrb.mxu1 %v597_v0  ;;  %v514_v0 = vadd.f32 %v1254_v42, %v1245_v36  ;;  %v590_v4 = vmax.f32 %v517_v61, 0.0  ;;  %698 = vmatpush.msrb.mxu3 %v676_v63  ;;  %v509_v36 = vadd.f32 %v1254_v42, %v1237_v28  ;;  %v674_v28 = vld [vmem:[%s1398_s4 + $0x18] sm:$0xff] }
  0xe7   : > { %646 = vmatpush.msrb.mxu2 %v616_v2  ;;  %v622_v2 = vperm.slane %v619_v59, 1 }
  0xe8   : > { %v566_v6 = vpop.f32.mrf.mxu2  ;;  %630 = vmatpush.msrb.mxu1 %v596_v3  ;;  %v602_v3 = vmax.f32 %v547_v58, 0.0  ;;  %v587_v32 = vmax.f32 %v509_v36, 0.0 }
  0xe9   : > { %647 = vmatpush.msrb.mxu2 %v615_v5  ;;  %v523_v9 = vpop.f32.mrf.mxu0  ;;  %v567_v13 = vadd.f32 %v1254_v42, %v566_v6  ;;  %v548_v48 = vpop.f32.mrf.mxu1  ;;  %v675_v5 = vld [vmem:[%s1398_s4 + $0x20] sm:$0xff]  ;;  %v589_v6 = vmax.f32 %v514_v0, 0.0 }
  0xea   : > { %v524_v45 = vadd.f32 %v1254_v42, %v523_v9  ;;  %v549_v54 = vadd.f32 %v1254_v42, %v548_v48  ;;  %699 = vmatpush.msrb.mxu3 %v675_v5  ;;  %v621_v9 = vperm.slane %v619_v59, 0 }
  0xeb   : > { %648 = vmatpush.msrb.mxu2 %v614_v8  ;;  %v610_v23 = vmax.f32 %v567_v13, 0.0  ;;  %v588_v8 = vmax.f32 %v512_v40, 0.0 }
  0xec   : > { %v593_v56 = vmax.f32 %v524_v45, 0.0  ;;  %v603_v46 = vmax.f32 %v549_v54, 0.0  ;;  %700 = vmatpush.msrb.mxu3 %v674_v28 }
  0xed   : > { %649 = vmatpush.msrb.mxu2 %v613_v10  ;;  %v586_v10 = vmax.f32 %v507_v7, 0.0 }
  0xee   : > { %701 = vmatpush.msrb.mxu3 %v673_v24 }
  0xef   : > { %650 = vmatpush.msrb.mxu2 %v612_v11  ;;  %v1095_v11 = vmov 0.0  }
  0xf0   : > { %v568_v12 = vpop.f32.mrf.mxu2  ;;  %300 = vst [vmem:[#allocation2] sm:$0x1] %v1095_v11 }
  0xf1   : > { %v569_v14 = vadd.f32 %v1254_v42, %v568_v12  ;;  %v526_v15 = vpop.f32.mrf.mxu0  ;;  %v671_v12 = vld [vmem:[%s1398_s4] sm:$0xff] }
  0xf2   : > { %v527_v41 = vadd.f32 %v1254_v42, %v526_v15 }
  0xf3   : > { %v611_v20 = vmax.f32 %v569_v14, 0.0 }
  0xf4   : > { %v594_v52 = vmax.f32 %v527_v41, 0.0 }
  0xf5   : > { %651 = vmatpush.msrb.mxu2 %v611_v20 }
  0xf7   : > { %652 = vmatpush.msrb.mxu2 %v610_v23  ;;  %v618_v15 = vld [vmem:[#allocation2] sm:$0x1] }
  0xf9   : > { %653 = vmatpush.msrb.mxu2 %v609_v29  ;;  %v528_v37 = vpop.f32.mrf.mxu0 }
  0xfa   : > { %v529_v38 = vadd.f32 %v1254_v42, %v528_v37  ;;  %v672_v42 = vld [vmem:[%s1398_s4 + $0x8] sm:$0xff] }
  0xfb   : > { %654 = vmatpush.msrb.mxu2 %v608_v35  ;;  %702 = vmatpush.msrb.mxu3 %v672_v42 }
  0xfc   : > { %v595_v47 = vmax.f32 %v529_v38, 0.0 }
  0xfd   : > { %655 = vmatpush.msrb.mxu2 %v607_v44  ;;  %703 = vmatpush.msrb.mxu3 %v671_v12 }
  0xfe   : > { %631 = vmatpush.msrb.mxu1 %v595_v47 }
  0xff   : > { %656 = vmatpush.msrb.mxu2 %v606_v50 }
 0x100   : > { %632 = vmatpush.msrb.mxu1 %v594_v52 }
 0x101   : > { %657 = vmatpush.msrb.mxu2 %v605_v53 }
 0x102   : > { %633 = vmatpush.msrb.mxu1 %v593_v56 }
 0x103   : > { %658 = vmatpush.msrb.mxu2 %v604_v57 }
 0x104   : > { %634 = vmatpush.msrb.mxu1 %v592_v62 }
 0x105   : > { %659 = vmatpush.msrb.mxu2 %v603_v46 }
 0x106   : > { %635 = vmatpush.msrb.mxu1 %v591_v1 }
 0x107   : > { %660 = vmatpush.msrb.mxu2 %v602_v3 }
 0x108   : > { %636 = vmatpush.msrb.mxu1 %v590_v4  ;;  %661 = vmatmul.f32.vlgmr.msrb.gmra.mxu2 %v622_v2 }
 0x10a   : > { %637 = vmatpush.msrb.mxu1 %v589_v6 }
 0x10c   : > { %638 = vmatpush.msrb.mxu1 %v588_v8 }
 0x10e   : > { %639 = vmatpush.msrb.mxu1 %v587_v32 }
 0x110   : > { %640 = vmatpush.msrb.mxu1 %v586_v10 }
 0x111   : > { %641 = vmatmul.f32.vlgmr.msrb.gmra.mxu1 %v621_v9 }
 0x18b   : > { %v662_v13 = vpop.f32.mrf.mxu2 }
 0x18e   : > { %v642_v14 = vpop.f32.mrf.mxu1 }
 0x18f   : > { %v663_v16 = vadd.f32 %v662_v13, %v642_v14 }
 0x191   : > { %v665_v17 = vadd.f32 %v663_v16, %v618_v15 }
 0x193   : > { %666 = vst [vmem:[#allocation2] sm:$0x1] %v665_v17 }
 0x19a   : > { %v670_v18 = vld [vmem:[#allocation2] sm:$0x1] }
 0x19b   : > { %704 = vmatmul.f32.vlgmr.msrb.gmra.mxu3 %v670_v18 }
 0x21e   : > { %v705_v20 = vpop.f32.mrf.mxu3 }
 0x21f   : > { %v706_v21 = vadd.f32 %v705_v20, %v687_v19 }
 0x221   : > { %708 = vst [vmem:[%s280_s18] sm:$0x1] %v706_v21 }
 0x222   : > { %1042 = shalt.err (!%p1039_p5)
}
 0x223   : > { %958 = dma.vmem_to_hbm [thread:$0]  (%p1171_p4), %s721_s19, 16, %s723_s20, %s710_s27  }
 0x224 PF: > { %p964_p6 = scmp.ge.s32.totalorder %s1093_s26, 2  ;;  %s734_s12 = sand.u32 1, %s1073_s21  }
 0x225   : > { %s735_s15 = scalar_lea.sflag [#allocation4], %s734_s12 }
 0x226   : > { %p961_p7 = pnand %p964_p6, %p1178_p8 }
 0x228   : > { %p962_p9 = pneg %p961_p7 }
 0x22a   : > { %1068 = dma.done.wait (%p962_p9), %s735_s15, 16  }
 0x22b   : > { %1070 = vsyncadd (%p962_p9), %s735_s15, 4294967280  ;;  %s19_s26 = sadd.s32 1, %s1093_s26   ;;  %s1403_s21 = smov %s1077_s22 }
 0x22c   : > { %p16_p10 = scmp.ge.s32.totalorder %s19_s26, 4   ;;  %s1404_s22 = smov %s1081_s23 }
 0x22d   : > { %s1405_s23 = smov %s1184_s10  ;;  %s1406_s24 = smov %s1089_s25 }
 0x22e   : > { %s1407_s25 = smov %s1409_s29  ;;  %18 = sbr.rel (!%p16_p10) target bundleno = 4 (0x4), region = 90 }
 0x233   :  { %740 = vsyncpa [#allocation4], 1 }
 0x234   :  { %742 = vsyncpa [#allocation4 + $0x1], 1 }

</bundles_post_ra>
